<compile_context>
chip_gen: v7x
topology: tpu7x:2x2x1
jax: 0.10.0
libtpu: 0.0.40
codegen_flags: <defaults>
</compile_context>

<pallas_src>
import functools

import jax
import jax.numpy as jnp
from jax.experimental import pallas as pl
from jax.experimental.pallas import tpu as pltpu


def _round_up(x, m):
    return (x + m - 1) // m * m


def _mlp_softmax_kernel(x_ref, w1_ref, b1_ref, w2_ref, b2_ref, o_ref, *, n_valid):
    # x: [TB, F], w1: [F, H], b1: [1, H], w2: [H, O_pad], b2: [1, O_pad], o: [TB, O_pad]

    # hidden = ReLU(x @ W1 + b1)
    h = jnp.dot(x_ref[...], w1_ref[...], preferred_element_type=jnp.float32) + b1_ref[...]
    h = jnp.maximum(h, 0.0)

    # logits = h @ W2 + b2  (O padded to 128 -> real MXU tile, lane-dense output)
    logits = jnp.dot(h, w2_ref[...], preferred_element_type=jnp.float32) + b2_ref[...]

    # Statically mask the padded class columns out of the softmax.
    col = jax.lax.broadcasted_iota(jnp.int32, logits.shape, 1)
    logits = jnp.where(col < n_valid, logits, jnp.float32(-1e30))

    # Numerically-stable softmax over the class axis (PyTorch Softmax on 2-D -> dim=1).
    m = jnp.max(logits, axis=-1, keepdims=True)
    e = jnp.exp(logits - m)
    denom = jnp.sum(e, axis=-1, keepdims=True)
    # Approx reciprocal runs on the EUP slot; the divide becomes a nearly-free op + VPU mul.
    o_ref[...] = (e * pl.reciprocal(denom, approx=True)).astype(o_ref.dtype)


def net_forward(x, w1, b1, w2, b2, *, block_batch=256):
    """Forward of Net: softmax(relu(x @ W1 + b1) @ W2 + b2).

    x: [B, F] f32, w1: [F, H], b1: [H], w2: [H, O], b2: [O]. Returns [B, O] f32 probs.
    """
    B, F = x.shape
    H = w1.shape[1]
    O = w2.shape[1]

    # ---- layout plumbing (wrapper-side, no extra kernel compute) ----
    # Lane-dense output: pad class dim up to a multiple of 128.
    O_pad = _round_up(max(O, 128), 128)
    # Batch tiling: TB multiple of 8 (sublane), padded batch multiple of TB.
    TB = min(block_batch, _round_up(B, 8))
    B_pad = _round_up(B, TB)

    x_p = x if B_pad == B else jnp.pad(x, ((0, B_pad - B), (0, 0)))
    w2_p = jnp.pad(w2, ((0, 0), (0, O_pad - O)))
    b2_p = jnp.pad(b2.reshape(1, O), ((0, 0), (0, O_pad - O)))
    b1_2d = b1.reshape(1, H)

    out = pl.pallas_call(
        functools.partial(_mlp_softmax_kernel, n_valid=O),
        out_shape=jax.ShapeDtypeStruct((B_pad, O_pad), jnp.float32),
        grid=(B_pad // TB,),
        in_specs=[
            pl.BlockSpec((TB, F), lambda i: (i, 0)),      # activations: tiled over batch
            pl.BlockSpec((F, H), lambda i: (0, 0)),       # weights/biases: VMEM-resident
            pl.BlockSpec((1, H), lambda i: (0, 0)),
            pl.BlockSpec((H, O_pad), lambda i: (0, 0)),
            pl.BlockSpec((1, O_pad), lambda i: (0, 0)),
        ],
        out_specs=pl.BlockSpec((TB, O_pad), lambda i: (i, 0)),
        compiler_params=pltpu.CompilerParams(
            dimension_semantics=("parallel",),  # batch tiles shard across TCs on v7x
        ),
    )(x_p, w1, b1_2d, w2_p, b2_p)

    return out[:B, :O]


if __name__ == "__main__":
    # Iris-like sizes: n_feature=4, n_hidden=32, n_out=3, batch=8
    B, n_feature, n_hidden, n_out = 8, 4, 32, 3

    key = jax.random.PRNGKey(0)
    kx, kw1, kb1, kw2, kb2 = jax.random.split(key, 5)

    x = jax.random.normal(kx, (B, n_feature), dtype=jnp.float32)

    # Deterministic parameter init (PyTorch-Linear-style uniform bounds).
    bound1 = 1.0 / jnp.sqrt(n_feature)
    w1 = jax.random.uniform(kw1, (n_feature, n_hidden), jnp.float32, -bound1, bound1)
    b1 = jax.random.uniform(kb1, (n_hidden,), jnp.float32, -bound1, bound1)

    bound2 = 1.0 / jnp.sqrt(n_hidden)
    w2 = jax.random.uniform(kw2, (n_hidden, n_out), jnp.float32, -bound2, bound2)
    b2 = jax.random.uniform(kb2, (n_out,), jnp.float32, -bound2, bound2)

    out = net_forward(x, w1, b1, w2, b2)
    out = jax.block_until_ready(out)

    # sanity check against plain-JAX reference
    h_ref = jnp.maximum(x @ w1 + b1, 0.0)
    logits_ref = h_ref @ w2 + b2
    ref = jax.nn.softmax(logits_ref, axis=-1)

    assert out.shape == (B, n_out)
    # tolerance loosened slightly because the kernel uses the EUP approx reciprocal
    assert jnp.allclose(out, ref, atol=5e-3), "mismatch vs reference"
    assert jnp.allclose(jnp.sum(out, axis=-1), 1.0, atol=5e-3)

    print("KERNEL_OK")
</pallas_src>

<mosaic_0001>
module attributes {stable_mosaic.version = 11 : i64} {
  func.func @_mlp_softmax_kernel(%arg0: i32, %arg1: memref<8x4xf32, #tpu.memory_space<vmem>>, %arg2: memref<4x32xf32, #tpu.memory_space<vmem>>, %arg3: memref<1x32xf32, #tpu.memory_space<vmem>>, %arg4: memref<32x128xf32, #tpu.memory_space<vmem>>, %arg5: memref<1x128xf32, #tpu.memory_space<vmem>>, %arg6: memref<8x128xf32, #tpu.memory_space<vmem>>) attributes {dimension_semantics = [#tpu.dimension_semantics<parallel>], iteration_bounds = array<i64: 1>, scalar_prefetch = 0 : i64, scratch_operands = 0 : i64, tpu.core_type = #tpu.core_type<tc>, window_params = [{transform_indices = @transform_0, window_bounds = array<i64: 8, 4>}, {pipeline_mode = #tpu.pipeline_mode<synchronous>, transform_indices = @transform_1, window_bounds = array<i64: 4, 32>}, {pipeline_mode = #tpu.pipeline_mode<synchronous>, transform_indices = @transform_2, window_bounds = array<i64: 1, 32>}, {pipeline_mode = #tpu.pipeline_mode<synchronous>, transform_indices = @transform_3, window_bounds = array<i64: 32, 128>}, {pipeline_mode = #tpu.pipeline_mode<synchronous>, transform_indices = @transform_4, window_bounds = array<i64: 1, 128>}, {transform_indices = @transform_5, window_bounds = array<i64: 8, 128>}]} {
    %c0 = arith.constant 0 : index
    %c0_0 = arith.constant 0 : index
    %0 = vector.load %arg1[%c0, %c0_0] : memref<8x4xf32, #tpu.memory_space<vmem>>, vector<8x4xf32>
    %c0_1 = arith.constant 0 : index
    %c0_2 = arith.constant 0 : index
    %1 = vector.load %arg2[%c0_1, %c0_2] : memref<4x32xf32, #tpu.memory_space<vmem>>, vector<4x32xf32>
    %cst = arith.constant dense<0.000000e+00> : vector<8x32xf32>
    %2 = tpu.matmul %0, %1, %cst {dimension_numbers = #tpu.dot_dimension_numbers<[1], [0], [0], [1], [0, 0, 1, 1], [], []>} : vector<8x4xf32>, vector<4x32xf32>, vector<8x32xf32> -> vector<8x32xf32>
    %c0_3 = arith.constant 0 : index
    %c0_4 = arith.constant 0 : index
    %3 = vector.load %arg3[%c0_3, %c0_4] : memref<1x32xf32, #tpu.memory_space<vmem>>, vector<1x32xf32>
    %4 = vector.broadcast %3 : vector<1x32xf32> to vector<8x32xf32>
    %5 = arith.addf %2, %4 : vector<8x32xf32>
    %cst_5 = arith.constant 0.000000e+00 : f32
    %6 = vector.broadcast %cst_5 : f32 to vector<8x32xf32>
    %7 = arith.maximumf %5, %6 : vector<8x32xf32>
    %c0_6 = arith.constant 0 : index
    %c0_7 = arith.constant 0 : index
    %8 = vector.load %arg4[%c0_6, %c0_7] : memref<32x128xf32, #tpu.memory_space<vmem>>, vector<32x128xf32>
    %cst_8 = arith.constant dense<0.000000e+00> : vector<8x128xf32>
    %9 = tpu.matmul %7, %8, %cst_8 {dimension_numbers = #tpu.dot_dimension_numbers<[1], [0], [0], [1], [0, 0, 1, 1], [], []>} : vector<8x32xf32>, vector<32x128xf32>, vector<8x128xf32> -> vector<8x128xf32>
    %c0_9 = arith.constant 0 : index
    %c0_10 = arith.constant 0 : index
    %10 = vector.load %arg5[%c0_9, %c0_10] : memref<1x128xf32, #tpu.memory_space<vmem>>, vector<1x128xf32>
    %11 = vector.broadcast %10 : vector<1x128xf32> to vector<8x128xf32>
    %12 = arith.addf %9, %11 : vector<8x128xf32>
    %13 = tpu.iota {dimensions = array<i32: 1>} : vector<8x128xi32>
    %c3_i32 = arith.constant 3 : i32
    %14 = vector.broadcast %c3_i32 : i32 to vector<8x128xi32>
    %15 = arith.cmpi slt, %13, %14 : vector<8x128xi32>
    %cst_11 = arith.constant -1.000000e+30 : f32
    %16 = vector.broadcast %cst_11 : f32 to vector<8x128xf32>
    %17 = arith.select %15, %12, %16 : vector<8x128xi1>, vector<8x128xf32>
    %cst_12 = arith.constant dense<0xFF800000> : vector<8xf32>
    %18 = vector.multi_reduction <maximumf>, %17, %cst_12 [1] : vector<8x128xf32> to vector<8xf32>
    %19 = vector.shape_cast %18 : vector<8xf32> to vector<8x1xf32>
    %20 = vector.broadcast %19 : vector<8x1xf32> to vector<8x128xf32>
    %21 = arith.subf %17, %20 : vector<8x128xf32>
    %22 = math.exp %21 : vector<8x128xf32>
    %cst_13 = arith.constant dense<0.000000e+00> : vector<8xf32>
    %23 = vector.multi_reduction <add>, %22, %cst_13 [1] : vector<8x128xf32> to vector<8xf32>
    %24 = vector.shape_cast %23 : vector<8xf32> to vector<8x1xf32>
    %25 = tpu.reciprocal %24 {approx = true} : vector<8x1xf32> -> vector<8x1xf32>
    %26 = vector.broadcast %25 : vector<8x1xf32> to vector<8x128xf32>
    %27 = arith.mulf %22, %26 : vector<8x128xf32>
    %c0_14 = arith.constant 0 : index
    %c0_15 = arith.constant 0 : index
    %28 = vector.load %arg6[%c0_14, %c0_15] : memref<8x128xf32, #tpu.memory_space<vmem>>, vector<8x128xf32>
    tpu.vector_store %arg6[%c0_14, %c0_15], %27 {strides = array<i32>} : memref<8x128xf32, #tpu.memory_space<vmem>>, vector<8x128xf32>,
    return
  }
  func.func @transform_0(%arg0: i32) -> (i32, i32) {
    %c0_i32 = arith.constant 0 : i32
    %c0_i32_0 = arith.constant 0 : i32
    return %arg0, %c0_i32 : i32, i32
  }
  func.func @transform_1(%arg0: i32) -> (i32, i32) {
    %c0_i32 = arith.constant 0 : i32
    %c0_i32_0 = arith.constant 0 : i32
    %c0_i32_1 = arith.constant 0 : i32
    return %c0_i32, %c0_i32_0 : i32, i32
  }
  func.func @transform_2(%arg0: i32) -> (i32, i32) {
    %c0_i32 = arith.constant 0 : i32
    %c0_i32_0 = arith.constant 0 : i32
    %c0_i32_1 = arith.constant 0 : i32
    return %c0_i32, %c0_i32_0 : i32, i32
  }
  func.func @transform_3(%arg0: i32) -> (i32, i32) {
    %c0_i32 = arith.constant 0 : i32
    %c0_i32_0 = arith.constant 0 : i32
    %c0_i32_1 = arith.constant 0 : i32
    return %c0_i32, %c0_i32_0 : i32, i32
  }
  func.func @transform_4(%arg0: i32) -> (i32, i32) {
    %c0_i32 = arith.constant 0 : i32
    %c0_i32_0 = arith.constant 0 : i32
    %c0_i32_1 = arith.constant 0 : i32
    return %c0_i32, %c0_i32_0 : i32, i32
  }
  func.func @transform_5(%arg0: i32) -> (i32, i32) {
    %c0_i32 = arith.constant 0 : i32
    %c0_i32_0 = arith.constant 0 : i32
    return %arg0, %c0_i32 : i32, i32
  }
}

</mosaic_0001>

<bundles_post_ra>
// kernel: tpu_custom_call.1
= control target key start
LH: loop header
LB: loop body
LE: loop exit
PB: predicated region body
PF: predicated region fallthrough
CT: control target
= control target key end

     0   :  { %10 = vsyncpa [#allocation3], 0  ;;  %s403_s0 = inlined_call_operand.vmem [shape: f32[8,4], index: 0, kind: input, shape index: {}]   ;;  %s404_s1 = inlined_call_operand.vmem [shape: f32[4,32], index: 1, kind: input, shape index: {}]   ;;  %s405_s2 = inlined_call_operand.vmem [shape: f32[1,32], index: 2, kind: input, shape index: {}]   ;;  %s406_s3 = inlined_call_operand.hbm [shape: f32[32,128], index: 3, kind: input, shape index: {}]   ;;  %s407_s4 = inlined_call_operand.vmem [shape: f32[1,128], index: 4, kind: input, shape index: {}]   ;;  %s408_s5 = inlined_call_operand.hbm [shape: f32[8,128], index: 5, kind: output, shape index: {}]  }
   0x1   :  { %11 = vsyncpa [#allocation4], 0  ;;  %s330_s18 = smov [#allocation2]   ;;  %s282_s22 = scalar_lea.hbm %s406_s3, 512 }
   0x2   :  { %s23_s19 = sshll.u32 %s330_s18, 4  ;;  %p283_p0 = scmp.ne.s32.totalorder %s406_s3, %s282_s22  ;;  %s24_s19 = int_to_ptr.vmem [resolvable:$true] %s23_s19 }
   0x3   :  { %p286_p1 = scmp.lt.u32.totalorder %s282_s22, %s406_s3 }
   0x5   :  { %p288_p2 = pnand %p286_p1, %p283_p0 }
   0x7   :  { %291 = shalt.err (!%p288_p2)
}
   0x8   :  { %s292_s27 = scalar_lea.vmem %s24_s19, 512  ;;  %p297_p4 = scmp.lt.s32.totalorder %s24_s19, %s24_s19 }
   0x9   :  { %p293_p3 = scmp.ne.s32.totalorder %s24_s19, %s292_s27  ;;  %p298_p5 = scmp.lt.s32.totalorder %s292_s27, %s292_s27 }
   0xb   :  { %p299_p6 = por %p298_p5, %p297_p4 }
   0xd   :  { %p300_p7 = pnand %p299_p6, %p293_p3 }
   0xf   :  { %303 = shalt.err (!%p300_p7)
}
  0x10   :  { %s331_s28 = smov 128   ;;  %s332_s29 = smov 8  }
  0x11   :  { %29 = dma.hbm_to_vmem [thread:$0]  %s406_s3, 512, %s24_s19, [#allocation3], %s331_s28, %s331_s28, %s332_s29  }
  0x12   :  { %326 = dma.done.wait [#allocation3], 512  }
  0x13   :  { %327 = vsyncadd [#allocation3], 4294966784  ;;  %v333_v0 = vmov 0.0   ;;  %vm334_vm0 = vmmov 0   ;;  %v335_v1 = vmov 0.0|0.0   ;;  %vm48_vm1 = vcmask 1043456  }
  0x14   :  { %249 = vmatprep.subr.mxu0 %v333_v0  ;;  %251 = vmatprep.mubr.msk.f32.mxu0 %vm334_vm0, %v333_v0  ;;  %vm44_vm2 = vcmask 31744   ;;  %v36_v2 = vld [vmem:[%s404_s1] sm:$0xf]  ;;  %v124_v5 = vld [vmem:[#allocation2 + $0x8] sm:$0xff]  ;;  %v125_v7 = vld [vmem:[#allocation2 + $0x10] sm:$0xff]  ;;  %vm134_vm3 = vcmask 261120   ;;  %v208_v15 = vlaneseq }
  0x15   :  { %265 = vmatprep.subr.bf16.mxu1 %v335_v1  ;;  %262 = vmatprep.mubr.msk.f32.mxu1 %vm334_vm0, %v333_v0  ;;  %v35_v3 = vld [vmem:[%s403_s0] sm:$0xff]  ;;  %v126_v8 = vld [vmem:[#allocation2 + $0x18] sm:$0xff] }
  0x16   :  { %v123_v4 = vld [vmem:[#allocation2] sm:$0xff]  ;;  %250 = vmatpush3.msk.msra.mxu0 %vm48_vm1, %v36_v2  ;;  %v269_v9 = vpack.c.bf16 %v126_v8, %v125_v7  ;;  %v209_v16 = vand.u32 127, %v208_v15 }
  0x17   :  { %252 = vmatmul.mubr.msk.f32.vlgmr.msra.gmra.mrb[0].mxu0 %vm44_vm2, %v35_v3  ;;  %v266_v6 = vpack.c.bf16 %v124_v5, %v123_v4  ;;  %v237_v10 = vld [vmem:[%s405_s2] ss:$0 sm:$0xff]  ;;  %s336_s2 = smov [#allocation5]  }
  0x18   :  { %v240_v17 = vld [vmem:[%s407_s4] ss:$0 sm:$0xff]  ;;  %vm210_vm4 = vcmp.lt.s32.totalorder %v209_v16, 3  ;;  %s228_s12 = sshll.u32 %s336_s2, 4  ;;  %s229_s12 = int_to_ptr.vmem [resolvable:$true] %s228_s12 }
  0x19   :  { %267 = vmatpush3.bf16.msra.mxu1 %v266_v6  ;;  %s304_s4 = scalar_lea.vmem %s229_s12, 128  ;;  %p309_p9 = scmp.lt.s32.totalorder %s229_s12, %s229_s12 }
  0x1a   :  { %268 = vmatprep.subr.bf16.mxu1 %v335_v1  ;;  %p305_p8 = scmp.ne.s32.totalorder %s229_s12, %s304_s4  ;;  %p310_p10 = scmp.lt.s32.totalorder %s304_s4, %s304_s4 }
  0x1c   :  { %p311_p11 = por %p310_p10, %p309_p9 }
  0x1d   :  { %270 = vmatpush3.bf16.msra.mxu1 %v269_v9 }
  0x1e   :  { %p312_p12 = pnand %p311_p11, %p305_p8 }
  0xea   :  { %v118_v11 = vpop.f32.mrb[0].mxu0 }
  0xeb   :  { %v119_v12 = vadd.f32 %v237_v10, %v118_v11  ;;  %v253_v13 = vpop.f32.mrb[1].mxu0 }
  0xed   :  { %v122_v14 = vmax.f32 %v119_v12, 0.0 }
  0xef   :  { %263 = vmatmul.mubr.msk.f32.vlgmr.msra.gmra.mrb[0].mxu1 %vm134_vm3, %v122_v14 }
 0x1c2   :  { %v204_v18 = vpop.f32.mrb[0].mxu1 }
 0x1c3   :  { %v205_v19 = vadd.f32 %v240_v17, %v204_v18  ;;  %v264_v20 = vpop.f32.mrb[1].mxu1 }
 0x1c5   :  { %v211_v21 = vsel %vm210_vm4, %v205_v19, -1e+30 }
 0x1c6   :  { %212 = vmax.xlane.f32.xlu0 %v211_v21 }
 0x253   :  { %v213_v22 = vpop.xlane.xlu0 %212 }
 0x254   :  { %v214_v23 = vsub.f32 %v211_v21, %v213_v22 }
 0x256   :  { %v215_v24 = vmul.f32 1.442695, %v214_v23 }
 0x258   :  { %278 = vpow2.f32 %v215_v24 }
 0x262   :  { %v279_v25 = vpop.eup %278 }
 0x263   :  { %217 = vadd.xlane.f32.xlu0 %v279_v25 }
 0x2f0   :  { %v218_v26 = vpop.xlane.xlu0 %217 }
 0x2f1   :  { %280 = vrcp.f32 %v218_v26 }
 0x2fb   :  { %v281_v27 = vpop.eup %280 }
 0x2fc   :  { %v220_v28 = vmul.f32 %v281_v27, %v279_v25 }
 0x2fe   :  { %221 = vst [vmem:[#allocation5] sm:$0xff] %v220_v28 }
 0x2ff   :  { %315 = shalt.err (!%p312_p12)
}
 0x300   :  { %s316_s15 = scalar_lea.hbm %s408_s5, 128 }
 0x301   :  { %p317_p13 = scmp.ne.s32.totalorder %s408_s5, %s316_s15  ;;  %p320_p0 = scmp.lt.u32.totalorder %s316_s15, %s408_s5 }
 0x303   :  { %p322_p1 = pnand %p320_p0, %p317_p13 }
 0x305   :  { %325 = shalt.err (!%p322_p1)
}
 0x306   :  { %231 = dma.vmem_to_hbm [thread:$0]  %s229_s12, 128, %s408_s5, [#allocation4]  }
 0x307   :  { %328 = dma.done.wait [#allocation4], 128  }
 0x308   :  { %329 = vsyncadd [#allocation4], 4294967168 }
 0x309   :  { %235 = vsyncpa [#allocation3], 1 }
 0x30a   :  { %236 = vsyncpa [#allocation4], 1 }

</bundles_post_ra>
